<compile_context>
chip_gen: v7x
topology: tpu7x:2x2x1
jax: 0.10.0
libtpu: 0.0.40
codegen_flags: <defaults>
</compile_context>

<pallas_src>
import functools
import math

import jax
import jax.numpy as jnp
from jax.experimental import pallas as pl
from jax.experimental.pallas import tpu as pltpu

LN_EPS = 1e-5  # torch.nn.LayerNorm default


# --------------------------------------------------------------------------- helpers
def _vmem_capacity_bytes():
    """Generation-aware VMEM capacity; conservative fallback (v7x per-TC = 64 MiB)."""
    try:
        return int(pltpu.get_tpu_info().vmem_capacity_bytes)
    except Exception:
        return 64 << 20


def _round_up(x, m):
    return ((x + m - 1) // m) * m


def _choose_pack(C, P, w_itemsize, w_bytes_cap=8 << 20):
    """Lane-packing factor: pack original rows so the output block is lane-dense."""
    if P >= 128:
        return 1
    pack = math.lcm(P, 128) // P                       # minimal lane-dense packing
    if (pack * C) * (pack * P) * w_itemsize <= w_bytes_cap:
        return pack
    # fall back to the widest packing whose output width stays <= 128 lanes
    pack = max(1, 128 // P)
    while pack > 1 and (pack * C) * (pack * P) * w_itemsize > w_bytes_cap:
        pack //= 2
    return max(pack, 1)


# --------------------------------------------------------------------- fused LN+Linear
def ln_linear(x2d, gamma, beta, weight, bias, *, io_dtype=jnp.bfloat16,
              target_grid_steps=8):
    """LayerNorm over last dim followed by Linear(C -> P), row-wise.

    x2d: (R, C);  gamma/beta: (C,);  weight: (P, C) torch layout;  bias: (P,).
    Returns (R, P) in io_dtype.
    """
    R, C = x2d.shape
    P = weight.shape[0]

    # Fold LayerNorm affine into the Linear:  (xn*g + b) @ W.T + bias
    #   == xn @ (g[:, None] * W.T) + (b @ W.T + bias)
    w_t = gamma.astype(jnp.float32)[:, None] * weight.astype(jnp.float32).T   # (C, P)
    b_eff = (beta.astype(jnp.float32) @ weight.astype(jnp.float32).T
             + bias.astype(jnp.float32))                                      # (P,)

    w_itemsize = jnp.dtype(io_dtype).itemsize
    pack = _choose_pack(C, P, w_itemsize)
    pC, pP = pack * C, pack * P

    eye = jnp.eye(pack, dtype=jnp.float32)
    w_blk = jnp.kron(eye, w_t).astype(io_dtype)                 # (pC, pP) block-diag
    b_pack = jnp.tile(b_eff, pack).reshape(1, pP)               # (1, pP)   f32
    seg01 = jnp.kron(eye, jnp.ones((C, 1), jnp.float32))        # (pC, pack) 0/1
    bcast01 = jnp.kron(eye, jnp.ones((1, C), jnp.float32))      # (pack, pC) 0/1

    # ---- generation-aware VMEM budget and row-tile size ----
    budget = (_vmem_capacity_bytes() * 3) // 4        # ~48 MiB v7x, ~96 MiB v5e/v6e
    io_b = jnp.dtype(io_dtype).itemsize
    resident = (2 * w_blk.size * w_itemsize
                + 2 * 4 * (seg01.size + bcast01.size + b_pack.size))
    # double-buffered x/out pipeline blocks + in-kernel f32 temporaries (x upcast,
    # centered x, squared x, f32 matmul output)
    per_row = 2 * pC * io_b + 2 * pP * io_b + 3 * pC * 4 + pP * 4
    bm_cap = max(8, ((budget - resident) // per_row) // 8 * 8)

    rp = pl.cdiv(R, pack)                              # packed-row count
    # fill VMEM, but keep ~target_grid_steps steps so pipelining / v7x 2-TC sharding work
    bm = min(bm_cap, max(8, _round_up(pl.cdiv(rp, target_grid_steps), 8)))
    if bm >= rp:
        bm = rp                                        # single block (full array dim)
        grid_rows = rp
    elif rp % bm == 0:
        grid_rows = rp
    else:
        # prefer a multiple-of-8 divisor of rp: avoids an extra HBM copy of x for padding
        d = bm
        thresh = max(8, bm // 4)
        while d >= thresh and rp % d != 0:
            d -= 8
        if d >= thresh and rp % d == 0:
            bm = d
            grid_rows = rp
        elif rp <= bm_cap:
            bm = rp                                    # one big block, still no padding
            grid_rows = rp
        else:
            # TODO(synk): a dedicated tail pallas_call would avoid this extra HBM copy.
            grid_rows = _round_up(rp, bm)

    r_need = grid_rows * pack
    xio = x2d.astype(io_dtype)
    if r_need != R:
        xio = jnp.pad(xio, ((0, r_need - R), (0, 0)))  # zero rows: LN stays finite
    xp = xio.reshape(grid_rows, pC)                    # contiguous -> free reshape

    inv_c = 1.0 / C

    def kernel(x_ref, seg_ref, bcast_ref, w_ref, b_ref, o_ref):
        x = x_ref[...].astype(jnp.float32)                                   # (bm, pC)
        seg = seg_ref[...]                                                   # (pC, pack)
        bc = bcast_ref[...]                                                  # (pack, pC)
        # per-original-row mean via an MXU segment-sum (keeps XLU free)
        ssum = jnp.dot(x, seg, preferred_element_type=jnp.float32)           # (bm, pack)
        mean = ssum * inv_c                                                  # small
        mean_b = jnp.dot(mean, bc, preferred_element_type=jnp.float32)       # (bm, pC)
        xc = x - mean_b
        vsum = jnp.dot(xc * xc, seg, preferred_element_type=jnp.float32)     # (bm, pack)
        rstd = jax.lax.rsqrt(vsum * inv_c + LN_EPS)                          # small EUP
        rstd_b = jnp.dot(rstd, bc, preferred_element_type=jnp.float32)       # (bm, pC)
        y = (xc * rstd_b).astype(w_ref.dtype)          # bf16 operands for the main MXU
        out = jnp.dot(y, w_ref[...], preferred_element_type=jnp.float32)     # (bm, pP)
        o_ref[...] = (out + b_ref[...]).astype(o_ref.dtype)

    vmem_limit = int(max(32 << 20, min(budget, 112 << 20)))
    out_packed = pl.pallas_call(
        kernel,
        out_shape=jax.ShapeDtypeStruct((grid_rows, pP), io_dtype),
        grid_spec=pltpu.PrefetchScalarGridSpec(
            num_scalar_prefetch=0,
            grid=(grid_rows // bm,),
            in_specs=[
                pl.BlockSpec((bm, pC), lambda i: (i, 0)),      # x tile (pipelined)
                pl.BlockSpec((pC, pack), lambda i: (0, 0)),    # resident: segment-sum
                pl.BlockSpec((pack, pC), lambda i: (0, 0)),    # resident: broadcast
                pl.BlockSpec((pC, pP), lambda i: (0, 0)),      # resident: block-diag W
                pl.BlockSpec((1, pP), lambda i: (0, 0)),       # resident: bias
            ],
            out_specs=pl.BlockSpec((bm, pP), lambda i: (i, 0)),
        ),
        compiler_params=pltpu.CompilerParams(
            dimension_semantics=("parallel",),   # row axis shards over v7x's 2 TCs
            vmem_limit_bytes=vmem_limit,
        ),
    )(xp, seg01, bcast01, w_blk, b_pack)

    return out_packed.reshape(r_need, P)[:R]


# ------------------------------------------------------------------------- unpatchify
def unpatchify_2d(x, in_chans, img_size):
    """x: (B, T, patch_dim) -> (B, in_chans, H, W).
    Mirrors einops 'B (h w) (p1 p2 C) -> B C (h p1) (w p2)'."""
    B, T, pd = x.shape
    patch_size = int(round((pd // in_chans) ** 0.5))
    H, W = img_size
    h, w = H // patch_size, W // patch_size
    assert h * w == T and patch_size * patch_size * in_chans == pd
    x = x.reshape(B, h, w, patch_size, patch_size, in_chans)
    x = jnp.transpose(x, (0, 5, 1, 3, 2, 4))
    return x.reshape(B, in_chans, h * patch_size, w * patch_size)


def unpatchify_1d(x, in_chans):
    """x: (B, T, patch_dim) -> (B, in_chans, T*patch).  'B T (p C) -> B C (T p)'."""
    B, T, pd = x.shape
    p = pd // in_chans
    x = x.reshape(B, T, p, in_chans)
    x = jnp.transpose(x, (0, 3, 1, 2))
    return x.reshape(B, in_chans, T * p)


# ------------------------------------------------------------------------ FinalBlock
def final_block_forward(x, params, *, in_chans, img_size=None, input_type='2d',
                        extras=0, io_dtype=jnp.bfloat16):
    """FinalBlock.forward with use_conv=False (final_layer = Identity)."""
    x = x[:, extras:, :]
    B, T, C = x.shape
    y2d = ln_linear(x.reshape(B * T, C), params["ln_gamma"], params["ln_beta"],
                    params["weight"], params["bias"], io_dtype=io_dtype)
    y = y2d.reshape(B, T, -1)
    if input_type == '2d':
        return unpatchify_2d(y, in_chans, img_size)
    return unpatchify_1d(y, in_chans)


def make_params(key, embed_dim, patch_dim):
    """Torch-like 1-D LayerNorm / Linear parameters."""
    k1, k2 = jax.random.split(key)
    bound = 1.0 / (embed_dim ** 0.5)
    return {
        "ln_gamma": jnp.ones((embed_dim,), jnp.float32),
        "ln_beta": jnp.zeros((embed_dim,), jnp.float32),
        "weight": jax.random.uniform(k1, (patch_dim, embed_dim), jnp.float32,
                                     -bound, bound),
        "bias": jax.random.uniform(k2, (patch_dim,), jnp.float32, -bound, bound),
    }


def _reference(x, params, *, in_chans, img_size=None, input_type='2d', extras=0):
    x = x[:, extras:, :]
    mean = jnp.mean(x, axis=-1, keepdims=True)
    var = jnp.mean((x - mean) ** 2, axis=-1, keepdims=True)
    xn = (x - mean) / jnp.sqrt(var + LN_EPS)
    y = xn * params["ln_gamma"] + params["ln_beta"]
    y = y @ params["weight"].T + params["bias"]
    if input_type == '2d':
        return unpatchify_2d(y, in_chans, img_size)
    return unpatchify_1d(y, in_chans)


if __name__ == "__main__":
    key = jax.random.PRNGKey(0)

    # ---- test 1: 2d config, f32 path (tight check) + bf16 path (default) ----
    embed_dim, patch_size, in_chans = 32, 2, 4
    img_size = (8, 8)
    patch_dim = patch_size ** 2 * in_chans                      # 16
    h, w = img_size[0] // patch_size, img_size[1] // patch_size
    B, T = 2, h * w                                             # T = 16
    k1, k2, key = jax.random.split(key, 3)
    x = jax.random.normal(k1, (B, T, embed_dim), jnp.float32)
    params = make_params(k2, embed_dim, patch_dim)
    ref = _reference(x, params, in_chans=in_chans, img_size=img_size,
                     input_type='2d', extras=0)

    fwd2d_f32 = jax.jit(functools.partial(final_block_forward, in_chans=in_chans,
                                          img_size=img_size, input_type='2d',
                                          extras=0, io_dtype=jnp.float32))
    out_f32 = jax.block_until_ready(fwd2d_f32(x, params))
    assert out_f32.shape == (B, in_chans, img_size[0], img_size[1])
    assert jnp.allclose(out_f32, ref, atol=2e-3, rtol=2e-3)

    fwd2d_bf16 = jax.jit(functools.partial(final_block_forward, in_chans=in_chans,
                                           img_size=img_size, input_type='2d',
                                           extras=0, io_dtype=jnp.bfloat16))
    out_bf16 = jax.block_until_ready(fwd2d_bf16(x, params))
    assert out_bf16.shape == (B, in_chans, img_size[0], img_size[1])
    assert jnp.allclose(out_bf16.astype(jnp.float32), ref, atol=8e-2, rtol=5e-2)

    # ---- test 2: 1d config, extras > 0, multi-step grid (bf16 path) ----
    embed_dim1, patch_size1, in_chans1 = 32, 4, 4
    patch_dim1 = patch_size1 * in_chans1                        # 16
    B1, T1, extras1 = 2, 68, 4                                  # 128 effective rows
    k3, k4, key = jax.random.split(key, 3)
    x1 = jax.random.normal(k3, (B1, T1, embed_dim1), jnp.float32)
    params1 = make_params(k4, embed_dim1, patch_dim1)
    fwd1d = jax.jit(functools.partial(final_block_forward, in_chans=in_chans1,
                                      input_type='1d', extras=extras1,
                                      io_dtype=jnp.bfloat16))
    out1d = jax.block_until_ready(fwd1d(x1, params1))
    ref1d = _reference(x1, params1, in_chans=in_chans1, input_type='1d',
                       extras=extras1)
    assert out1d.shape == (B1, in_chans1, (T1 - extras1) * patch_size1)
    assert jnp.allclose(out1d.astype(jnp.float32), ref1d, atol=8e-2, rtol=5e-2)

    # ---- test 3: ragged row count (partial packed row; no full-array pad path) ----
    B2, T2 = 2, 63                                              # 118 effective rows
    k5, _ = jax.random.split(key)
    x2 = jax.random.normal(k5, (B2, T2, embed_dim1), jnp.float32)
    out2 = jax.block_until_ready(fwd1d(x2, params1))
    ref2 = _reference(x2, params1, in_chans=in_chans1, input_type='1d',
                      extras=extras1)
    assert out2.shape == (B2, in_chans1, (T2 - extras1) * patch_size1)
    assert jnp.allclose(out2.astype(jnp.float32), ref2, atol=8e-2, rtol=5e-2)

    print("KERNEL_OK")
</pallas_src>

<mosaic_0001>
module attributes {stable_mosaic.version = 11 : i64} {
  func.func @kernel(%arg0: i32, %arg1: memref<4x256xf32, #tpu.memory_space<vmem>>, %arg2: memref<256x8xf32, #tpu.memory_space<vmem>>, %arg3: memref<8x256xf32, #tpu.memory_space<vmem>>, %arg4: memref<256x128xf32, #tpu.memory_space<vmem>>, %arg5: memref<1x128xf32, #tpu.memory_space<vmem>>, %arg6: memref<4x128xf32, #tpu.memory_space<vmem>>) attributes {dimension_semantics = [#tpu.dimension_semantics<parallel>], iteration_bounds = array<i64: 1>, scalar_prefetch = 0 : i64, scratch_operands = 0 : i64, tpu.core_type = #tpu.core_type<tc>, window_params = [{transform_indices = @transform_0, window_bounds = array<i64: 4, 256>}, {pipeline_mode = #tpu.pipeline_mode<synchronous>, transform_indices = @transform_1, window_bounds = array<i64: 256, 8>}, {pipeline_mode = #tpu.pipeline_mode<synchronous>, transform_indices = @transform_2, window_bounds = array<i64: 8, 256>}, {pipeline_mode = #tpu.pipeline_mode<synchronous>, transform_indices = @transform_3, window_bounds = array<i64: 256, 128>}, {pipeline_mode = #tpu.pipeline_mode<synchronous>, transform_indices = @transform_4, window_bounds = array<i64: 1, 128>}, {transform_indices = @transform_5, window_bounds = array<i64: 4, 128>}]} {
    %c0 = arith.constant 0 : index
    %c0_0 = arith.constant 0 : index
    %0 = vector.load %arg1[%c0, %c0_0] : memref<4x256xf32, #tpu.memory_space<vmem>>, vector<4x256xf32>
    %c0_1 = arith.constant 0 : index
    %c0_2 = arith.constant 0 : index
    %1 = vector.load %arg2[%c0_1, %c0_2] : memref<256x8xf32, #tpu.memory_space<vmem>>, vector<256x8xf32>
    %c0_3 = arith.constant 0 : index
    %c0_4 = arith.constant 0 : index
    %2 = vector.load %arg3[%c0_3, %c0_4] : memref<8x256xf32, #tpu.memory_space<vmem>>, vector<8x256xf32>
    %cst = arith.constant dense<0.000000e+00> : vector<4x8xf32>
    %3 = tpu.matmul %0, %1, %cst {dimension_numbers = #tpu.dot_dimension_numbers<[1], [0], [0], [1], [0, 0, 1, 1], [], []>} : vector<4x256xf32>, vector<256x8xf32>, vector<4x8xf32> -> vector<4x8xf32>
    %cst_5 = arith.constant 3.125000e-02 : f32
    %4 = vector.broadcast %cst_5 : f32 to vector<4x8xf32>
    %5 = arith.mulf %3, %4 : vector<4x8xf32>
    %cst_6 = arith.constant dense<0.000000e+00> : vector<4x256xf32>
    %6 = tpu.matmul %5, %2, %cst_6 {dimension_numbers = #tpu.dot_dimension_numbers<[1], [0], [0], [1], [0, 0, 1, 1], [], []>} : vector<4x8xf32>, vector<8x256xf32>, vector<4x256xf32> -> vector<4x256xf32>
    %7 = arith.subf %0, %6 : vector<4x256xf32>
    %8 = arith.mulf %7, %7 : vector<4x256xf32>
    %cst_7 = arith.constant dense<0.000000e+00> : vector<4x8xf32>
    %9 = tpu.matmul %8, %1, %cst_7 {dimension_numbers = #tpu.dot_dimension_numbers<[1], [0], [0], [1], [0, 0, 1, 1], [], []>} : vector<4x256xf32>, vector<256x8xf32>, vector<4x8xf32> -> vector<4x8xf32>
    %cst_8 = arith.constant 3.125000e-02 : f32
    %10 = vector.broadcast %cst_8 : f32 to vector<4x8xf32>
    %11 = arith.mulf %9, %10 : vector<4x8xf32>
    %cst_9 = arith.constant 9.99999974E-6 : f32
    %12 = vector.broadcast %cst_9 : f32 to vector<4x8xf32>
    %13 = arith.addf %11, %12 : vector<4x8xf32>
    %14 = math.rsqrt %13 : vector<4x8xf32>
    %cst_10 = arith.constant dense<0.000000e+00> : vector<4x256xf32>
    %15 = tpu.matmul %14, %2, %cst_10 {dimension_numbers = #tpu.dot_dimension_numbers<[1], [0], [0], [1], [0, 0, 1, 1], [], []>} : vector<4x8xf32>, vector<8x256xf32>, vector<4x256xf32> -> vector<4x256xf32>
    %16 = arith.mulf %7, %15 : vector<4x256xf32>
    %c0_11 = arith.constant 0 : index
    %c0_12 = arith.constant 0 : index
    %17 = vector.load %arg4[%c0_11, %c0_12] : memref<256x128xf32, #tpu.memory_space<vmem>>, vector<256x128xf32>
    %cst_13 = arith.constant dense<0.000000e+00> : vector<4x128xf32>
    %18 = tpu.matmul %16, %17, %cst_13 {dimension_numbers = #tpu.dot_dimension_numbers<[1], [0], [0], [1], [0, 0, 1, 1], [], []>} : vector<4x256xf32>, vector<256x128xf32>, vector<4x128xf32> -> vector<4x128xf32>
    %c0_14 = arith.constant 0 : index
    %c0_15 = arith.constant 0 : index
    %19 = vector.load %arg5[%c0_14, %c0_15] : memref<1x128xf32, #tpu.memory_space<vmem>>, vector<1x128xf32>
    %20 = vector.broadcast %19 : vector<1x128xf32> to vector<4x128xf32>
    %21 = arith.addf %18, %20 : vector<4x128xf32>
    %c0_16 = arith.constant 0 : index
    %c0_17 = arith.constant 0 : index
    %22 = vector.load %arg6[%c0_16, %c0_17] : memref<4x128xf32, #tpu.memory_space<vmem>>, vector<4x128xf32>
    tpu.vector_store %arg6[%c0_16, %c0_17], %21 {strides = array<i32>} : memref<4x128xf32, #tpu.memory_space<vmem>>, vector<4x128xf32>,
    return
  }
  func.func @transform_0(%arg0: i32) -> (i32, i32) {
    %c0_i32 = arith.constant 0 : i32
    %c0_i32_0 = arith.constant 0 : i32
    return %arg0, %c0_i32 : i32, i32
  }
  func.func @transform_1(%arg0: i32) -> (i32, i32) {
    %c0_i32 = arith.constant 0 : i32
    %c0_i32_0 = arith.constant 0 : i32
    %c0_i32_1 = arith.constant 0 : i32
    return %c0_i32, %c0_i32_0 : i32, i32
  }
  func.func @transform_2(%arg0: i32) -> (i32, i32) {
    %c0_i32 = arith.constant 0 : i32
    %c0_i32_0 = arith.constant 0 : i32
    %c0_i32_1 = arith.constant 0 : i32
    return %c0_i32, %c0_i32_0 : i32, i32
  }
  func.func @transform_3(%arg0: i32) -> (i32, i32) {
    %c0_i32 = arith.constant 0 : i32
    %c0_i32_0 = arith.constant 0 : i32
    %c0_i32_1 = arith.constant 0 : i32
    return %c0_i32, %c0_i32_0 : i32, i32
  }
  func.func @transform_4(%arg0: i32) -> (i32, i32) {
    %c0_i32 = arith.constant 0 : i32
    %c0_i32_0 = arith.constant 0 : i32
    %c0_i32_1 = arith.constant 0 : i32
    return %c0_i32, %c0_i32_0 : i32, i32
  }
  func.func @transform_5(%arg0: i32) -> (i32, i32) {
    %c0_i32 = arith.constant 0 : i32
    %c0_i32_0 = arith.constant 0 : i32
    return %arg0, %c0_i32 : i32, i32
  }
}

</mosaic_0001>

<bundles_post_ra>
// kernel: tile.8
= control target key start
LH: loop header
LB: loop body
LE: loop exit
PB: predicated region body
PF: predicated region fallthrough
CT: control target
= control target key end

     0   :  { %s22_s0 = inlined_call_operand.vmem [shape: f32[16], index: 0, kind: input, shape index: {}]   ;;  %s23_s1 = inlined_call_operand.vmem [shape: f32[8,16], index: 1, kind: output, shape index: {}]  }
   0x1   :  { %v4_v0 = vld [vmem:[%s22_s0] ss:$0 sm:$0xff] }
   0x2   :  { %5 = vst [vmem:[%s23_s1] sm:$0xff] %v4_v0 }

// kernel: tile.9
= control target key start
LH: loop header
LB: loop body
LE: loop exit
PB: predicated region body
PF: predicated region fallthrough
CT: control target
= control target key end

     0   :  { %s67_s10 = smov 112   ;;  %s68_s11 = smov 80   ;;  %vm3_vm0 = vcmask 130048   ;;  %vm9_vm1 = vcmask 1048448   ;;  %vm15_vm2 = vcmask 917248   ;;  %vm21_vm3 = vcmask 786048   ;;  %s111_s0 = inlined_call_operand.vmem [shape: f32[8,16], index: 0, kind: input, shape index: {}]   ;;  %s112_s1 = inlined_call_operand.vmem [shape: f32[1,128], index: 1, kind: output, shape index: {}]  }
   0x1   :  { %v53_v0 = vld [vmem:[%s111_s0 + $0x7] sm:$0x1]   ;;  %v55_v1 = vld [vmem:[%s111_s0 + $0x5] sm:$0x1]   ;;  %v54_v2 = vld [vmem:[%s111_s0 + $0x6] sm:$0x1]  }
   0x2   :  { %7 = vrot.lane.b32.xlu0 %v53_v0, %s67_s10  ;;  %19 = vrot.lane.b32.xlu1 %v55_v1, %s68_s11  ;;  %v56_v3 = vld [vmem:[%s111_s0 + $0x4] sm:$0x1]   ;;  %v2_v4 = vld [vmem:[%s111_s0] sm:$0x1]   ;;  %s69_s18 = smov 96   ;;  %s70_s19 = smov 64  }
   0x3   :  { %4 = vst.msk [vmem:[#allocation0] sm:$0x1] %vm3_vm0, %v2_v4   ;;  %v57_v5 = vld [vmem:[%s111_s0 + $0x3] sm:$0x1]   ;;  %v58_v6 = vld [vmem:[%s111_s0 + $0x2] sm:$0x1]  }
   0x4   :  { %s71_s24 = smov 48   ;;  %s72_s25 = smov 32   ;;  %v59_v7 = vld [vmem:[%s111_s0 + $0x1] sm:$0x1]   ;;  %vm27_vm4 = vcmask 654848   ;;  %vm33_vm5 = vcmask 523648  }
   0x5   :  { %s73_s0 = smov 16   ;;  %vm39_vm6 = vcmask 392448   ;;  %vm45_vm7 = vcmask 261248  }
   0x6   :  { %13 = vrot.lane.b32.xlu0 %v54_v2, %s69_s18  ;;  %25 = vrot.lane.b32.xlu1 %v56_v3, %s70_s19 }
   0xa   :  { %31 = vrot.lane.b32.xlu0 %v57_v5, %s71_s24  ;;  %37 = vrot.lane.b32.xlu1 %v58_v6, %s72_s25 }
   0xe   :  { %43 = vrot.lane.b32.xlu0 %v59_v7, %s73_s0 }
  0x74   :  { %v8_v8 = vpop.permute.xlu0 %7   ;;  %v20_v9 = vpop.permute.xlu1 %19  }
  0x75   :  { %10 = vst.msk [vmem:[#allocation0] sm:$0x1] %vm9_vm1, %v8_v8  }
  0x78   :  { %v14_v10 = vpop.permute.xlu0 %13   ;;  %v26_v11 = vpop.permute.xlu1 %25  }
  0x79   :  { %16 = vst.msk [vmem:[#allocation0] sm:$0x1] %vm15_vm2, %v14_v10  }
  0x7a   :  { %22 = vst.msk [vmem:[#allocation0] sm:$0x1] %vm21_vm3, %v20_v9  }
  0x7b   :  { %28 = vst.msk [vmem:[#allocation0] sm:$0x1] %vm27_vm4, %v26_v11  }
  0x7c   :  { %v32_v12 = vpop.permute.xlu0 %31   ;;  %v38_v13 = vpop.permute.xlu1 %37  }
  0x7d   :  { %34 = vst.msk [vmem:[#allocation0] sm:$0x1] %vm33_vm5, %v32_v12  }
  0x7e   :  { %40 = vst.msk [vmem:[#allocation0] sm:$0x1] %vm39_vm6, %v38_v13  }
  0x80   :  { %v44_v14 = vpop.permute.xlu0 %43  }
  0x81   :  { %46 = vst.msk [vmem:[#allocation0] sm:$0x1] %vm45_vm7, %v44_v14  }
  0x88   :  { %v50_v15 = vld [vmem:[#allocation0] sm:$0x1] }
  0x89   :  { %52 = vst [vmem:[%s112_s1] sm:$0x1] %v50_v15 }

// kernel: final_block_forward.1
= control target key start
LH: loop header
LB: loop body
LE: loop exit
PB: predicated region body
PF: predicated region fallthrough
CT: control target
= control target key end

     0   :  { %v690_v52 = vmov 0.0   ;;  %vm129_vm0 = vcmask 64512   ;;  %s941_s1 = inlined_call_operand.vmem [shape: f32[256,8], index: 1, kind: input, shape index: {}]   ;;  %s942_s0 = inlined_call_operand.vmem [shape: f32[4,256], index: 0, kind: input, shape index: {}]   ;;  %s943_s2 = inlined_call_operand.vmem [shape: f32[8,256], index: 2, kind: input, shape index: {}]   ;;  %s944_s3 = inlined_call_operand.vmem [shape: f32[256,128], index: 3, kind: input, shape index: {}]   ;;  %s945_s4 = inlined_call_operand.vmem [shape: f32[1,128], index: 4, kind: input, shape index: {}]   ;;  %s946_s5 = inlined_call_operand.vmem [shape: f32[4,128], index: 5, kind: output, shape index: {}]  }
   0x1   :  { %v37_v0 = vld [vmem:[%s941_s1 + $0x80] sm:$0xff]  ;;  %v38_v1 = vld [vmem:[%s941_s1 + $0x88] sm:$0xff]  ;;  %v39_v5 = vld [vmem:[%s941_s1 + $0x90] sm:$0xff] }
   0x2   :  { %v21_v2 = vld [vmem:[%s941_s1] sm:$0xff]  ;;  %v590_v3 = vpack.c.bf16 %v38_v1, %v37_v0  ;;  %v22_v4 = vld [vmem:[%s941_s1 + $0x8] sm:$0xff]  ;;  %v40_v6 = vld [vmem:[%s941_s1 + $0x98] sm:$0xff] }
   0x3   :  { %v592_v7 = vpack.c.bf16 %v22_v4, %v21_v2  ;;  %v594_v8 = vpack.c.bf16 %v40_v6, %v39_v5  ;;  %v23_v9 = vld [vmem:[%s941_s1 + $0x10] sm:$0xff]  ;;  %v24_v10 = vld [vmem:[%s941_s1 + $0x18] sm:$0xff]  ;;  %v41_v11 = vld [vmem:[%s941_s1 + $0xa0] sm:$0xff] }
   0x4   :  { %591 = vmatprep.subr.bf16.mxu0 %v590_v3  ;;  %v42_v12 = vld [vmem:[%s941_s1 + $0xa8] sm:$0xff]  ;;  %623 = vmatprep.subr.bf16.mxu1 %v590_v3  ;;  %v596_v13 = vpack.c.bf16 %v24_v10, %v23_v9  ;;  %v25_v15 = vld [vmem:[%s941_s1 + $0x20] sm:$0xff]  ;;  %v43_v17 = vld [vmem:[%s941_s1 + $0xb0] sm:$0xff] }
   0x5   :  { %593 = vmatpush3.bf16.msra.mxu0 %v592_v7  ;;  %625 = vmatpush3.bf16.msra.mxu1 %v592_v7  ;;  %v598_v14 = vpack.c.bf16 %v42_v12, %v41_v11  ;;  %v26_v16 = vld [vmem:[%s941_s1 + $0x28] sm:$0xff]  ;;  %v44_v18 = vld [vmem:[%s941_s1 + $0xb8] sm:$0xff]  ;;  %v27_v21 = vld [vmem:[%s941_s1 + $0x30] sm:$0xff] }
   0x6   :  { %595 = vmatprep.subr.bf16.mxu0 %v594_v8  ;;  %627 = vmatprep.subr.bf16.mxu1 %v594_v8  ;;  %v600_v19 = vpack.c.bf16 %v26_v16, %v25_v15  ;;  %v602_v20 = vpack.c.bf16 %v44_v18, %v43_v17  ;;  %v28_v22 = vld [vmem:[%s941_s1 + $0x38] sm:$0xff]  ;;  %v45_v23 = vld [vmem:[%s941_s1 + $0xc0] sm:$0xff]  ;;  %v46_v24 = vld [vmem:[%s941_s1 + $0xc8] sm:$0xff] }
   0x7   :  { %v778_v25 = vld [vmem:[%s942_s0] sm:$0xff]  ;;  %v604_v27 = vpack.c.bf16 %v28_v22, %v27_v21  ;;  %v606_v28 = vpack.c.bf16 %v46_v24, %v45_v23  ;;  %v30_v30 = vld [vmem:[%s941_s1 + $0x48] sm:$0xff]  ;;  %v47_v31 = vld [vmem:[%s941_s1 + $0xd0] sm:$0xff] }
   0x8   :  { %v56_v26 = vcombine.high %v778_v25, %v778_v25  ;;  %v29_v29 = vld [vmem:[%s941_s1 + $0x40] sm:$0xff]  ;;  %v48_v32 = vld [vmem:[%s941_s1 + $0xd8] sm:$0xff]  ;;  %v31_v35 = vld [vmem:[%s941_s1 + $0x50] sm:$0xff] }
   0x9   :  { %597 = vmatpush3.bf16.msra.mxu0 %v596_v13  ;;  %629 = vmatpush3.bf16.msra.mxu1 %v596_v13  ;;  %v608_v33 = vpack.c.bf16 %v30_v30, %v29_v29  ;;  %v610_v34 = vpack.c.bf16 %v48_v32, %v47_v31  ;;  %v32_v36 = vld [vmem:[%s941_s1 + $0x58] sm:$0xff]  ;;  %v49_v37 = vld [vmem:[%s941_s1 + $0xe0] sm:$0xff]  ;;  %v50_v38 = vld [vmem:[%s941_s1 + $0xe8] sm:$0xff] }
   0xa   :  { %599 = vmatprep.subr.bf16.mxu0 %v598_v14  ;;  %631 = vmatprep.subr.bf16.mxu1 %v598_v14  ;;  %v612_v39 = vpack.c.bf16 %v32_v36, %v31_v35  ;;  %v614_v40 = vpack.c.bf16 %v50_v38, %v49_v37  ;;  %v33_v41 = vld [vmem:[%s941_s1 + $0x60] sm:$0xff]  ;;  %v34_v42 = vld [vmem:[%s941_s1 + $0x68] sm:$0xff]  ;;  %v51_v43 = vld [vmem:[%s941_s1 + $0xf0] sm:$0xff] }
   0xb   :  { %122 = vmatprep.mubr.f32.mxu0 %v56_v26  ;;  %v52_v44 = vld [vmem:[%s941_s1 + $0xf8] sm:$0xff]  ;;  %v616_v45 = vpack.c.bf16 %v34_v42, %v33_v41  ;;  %v35_v47 = vld [vmem:[%s941_s1 + $0x70] sm:$0xff]  ;;  %v54_v50 = vld [vmem:[%s943_s2 + $0x8] sm:$0xff] }
   0xc   :  { %v618_v46 = vpack.c.bf16 %v52_v44, %v51_v43  ;;  %v36_v48 = vld [vmem:[%s941_s1 + $0x78] sm:$0xff]  ;;  %v53_v51 = vld [vmem:[%s943_s2] sm:$0xff]  ;;  %v382_v0 = vld [vmem:[%s944_s3 + $0x88] sm:$0xff] }
   0xd   :  { %601 = vmatpush3.bf16.msra.mxu0 %v600_v19  ;;  %633 = vmatpush3.bf16.msra.mxu1 %v600_v19  ;;  %v620_v49 = vpack.c.bf16 %v36_v48, %v35_v47  ;;  %v381_v63 = vld [vmem:[%s944_s3 + $0x80] sm:$0xff]  ;;  %v366_v3 = vld [vmem:[%s944_s3 + $0x8] sm:$0xff]  ;;  %v383_v4 = vld [vmem:[%s944_s3 + $0x90] sm:$0xff] }
   0xe   :  { %603 = vmatprep.subr.bf16.mxu0 %v602_v20  ;;  %635 = vmatprep.subr.bf16.mxu1 %v602_v20  ;;  %v365_v1 = vld [vmem:[%s944_s3] sm:$0xff]  ;;  %v654_v2 = vpack.c.bf16 %v382_v0, %v381_v63  ;;  %v384_v5 = vld [vmem:[%s944_s3 + $0x98] sm:$0xff]  ;;  %v367_v8 = vld [vmem:[%s944_s3 + $0x10] sm:$0xff] }
   0xf   :  { %v656_v6 = vpack.c.bf16 %v366_v3, %v365_v1  ;;  %v658_v7 = vpack.c.bf16 %v384_v5, %v383_v4  ;;  %v368_v9 = vld [vmem:[%s944_s3 + $0x18] sm:$0xff]  ;;  %v385_v10 = vld [vmem:[%s944_s3 + $0xa0] sm:$0xff]  ;;  %v386_v11 = vld [vmem:[%s944_s3 + $0xa8] sm:$0xff] }
  0x10   :  { %v660_v12 = vpack.c.bf16 %v368_v9, %v367_v8  ;;  %v662_v13 = vpack.c.bf16 %v386_v11, %v385_v10  ;;  %v369_v14 = vld [vmem:[%s944_s3 + $0x20] sm:$0xff]  ;;  %v370_v15 = vld [vmem:[%s944_s3 + $0x28] sm:$0xff]  ;;  %v387_v16 = vld [vmem:[%s944_s3 + $0xb0] sm:$0xff] }
  0x11   :  { %605 = vmatpush3.bf16.msra.mxu0 %v604_v27  ;;  %637 = vmatpush3.bf16.msra.mxu1 %v604_v27  ;;  %v388_v17 = vld [vmem:[%s944_s3 + $0xb8] sm:$0xff]  ;;  %v664_v18 = vpack.c.bf16 %v370_v15, %v369_v14  ;;  %v371_v20 = vld [vmem:[%s944_s3 + $0x30] sm:$0xff]  ;;  %v389_v22 = vld [vmem:[%s944_s3 + $0xc0] sm:$0xff] }
  0x12   :  { %607 = vmatprep.subr.bf16.mxu0 %v606_v28  ;;  %639 = vmatprep.subr.bf16.mxu1 %v606_v28  ;;  %v666_v19 = vpack.c.bf16 %v388_v17, %v387_v16  ;;  %v372_v21 = vld [vmem:[%s944_s3 + $0x38] sm:$0xff]  ;;  %v390_v23 = vld [vmem:[%s944_s3 + $0xc8] sm:$0xff]  ;;  %v373_v26 = vld [vmem:[%s944_s3 + $0x40] sm:$0xff] }
  0x13   :  { %v668_v24 = vpack.c.bf16 %v372_v21, %v371_v20  ;;  %v374_v27 = vld [vmem:[%s944_s3 + $0x48] sm:$0xff]  ;;  %v391_v28 = vld [vmem:[%s944_s3 + $0xd0] sm:$0xff]  ;;  %v392_v29 = vld [vmem:[%s944_s3 + $0xd8] sm:$0xff] }
  0x14   :  { %v672_v30 = vpack.c.bf16 %v374_v27, %v373_v26  ;;  %v674_v31 = vpack.c.bf16 %v392_v29, %v391_v28  ;;  %v375_v32 = vld [vmem:[%s944_s3 + $0x50] sm:$0xff]  ;;  %v393_v41 = vld [vmem:[%s944_s3 + $0xe0] sm:$0xff]  ;;  %v394_v42 = vld [vmem:[%s944_s3 + $0xe8] sm:$0xff] }
  0x15   :  { %609 = vmatpush3.bf16.msra.mxu0 %v608_v33  ;;  %641 = vmatpush3.bf16.msra.mxu1 %v608_v33  ;;  %v376_v33 = vld [vmem:[%s944_s3 + $0x58] sm:$0xff]  ;;  %v678_v43 = vpack.c.bf16 %v394_v42, %v393_v41  ;;  %v377_v44 = vld [vmem:[%s944_s3 + $0x60] sm:$0xff]  ;;  %v395_v47 = vld [vmem:[%s944_s3 + $0xf0] sm:$0xff] }
  0x16   :  { %611 = vmatprep.subr.bf16.mxu0 %v610_v34  ;;  %643 = vmatprep.subr.bf16.mxu1 %v610_v34  ;;  %v676_v34 = vpack.c.bf16 %v376_v33, %v375_v32  ;;  %v396_v48 = vld [vmem:[%s944_s3 + $0xf8] sm:$0xff] }
  0x19   :  { %613 = vmatpush3.bf16.msra.mxu0 %v612_v39  ;;  %645 = vmatpush3.bf16.msra.mxu1 %v612_v39 }
  0x1a   :  { %615 = vmatprep.subr.bf16.mxu0 %v614_v40  ;;  %647 = vmatprep.subr.bf16.mxu1 %v614_v40 }
  0x1d   :  { %617 = vmatpush3.bf16.msra.mxu0 %v616_v45  ;;  %649 = vmatpush3.bf16.msra.mxu1 %v616_v45  ;;  %v378_v45 = vld [vmem:[%s944_s3 + $0x68] sm:$0xff] }
  0x1e   :  { %619 = vmatprep.subr.bf16.mxu0 %v618_v46  ;;  %651 = vmatprep.subr.bf16.mxu1 %v618_v46  ;;  %v680_v46 = vpack.c.bf16 %v378_v45, %v377_v44 }
  0x21   :  { %621 = vmatpush3.bf16.msra.mxu0 %v620_v49  ;;  %653 = vmatpush3.bf16.msra.mxu1 %v620_v49  ;;  %v682_v49 = vpack.c.bf16 %v396_v48, %v395_v47 }
  0x22   :  { %133 = vmatprep.subr.mxu0 %v54_v50  ;;  %655 = vmatprep.subr.bf16.mxu1 %v654_v2 }
  0x24   :  { %123 = vmatmul.mubr.f32.vlgmr.msra.gmra.mrb[0].mxu0 %v778_v25 }
  0x25   :  { %134 = vmatpush1.msra.mxu0 %v53_v51  ;;  %197 = vmatprep.mubr.f32.mxu0 %v690_v52 }
  0x26   :  { %289 = vmatprep.subr.mxu0 %v54_v50  ;;  %v379_v50 = vld [vmem:[%s944_s3 + $0x70] sm:$0xff] }
  0xf7   :  { %v517_v53 = vpop.f32.mrb[0].mxu0 }
  0xf8   :  { %v518_v54 = vpop.f32.mrb[1].mxu0 }
  0xf9   :  { %v519_v55 = vadd.f32 %v518_v54, %v517_v53 }
  0xfb   :  { %v128_v56 = vmul.f32 0.03125, %v519_v55 }
  0xfd   :  { %482 = vmatmul.mubr.msk.f32.vlgmr.msra.gmra.mrb[2].mxu0 %vm129_vm0, %v128_v56 }
  0xfe   :  { %290 = vmatpush1.msra.mxu0 %v53_v51  ;;  %353 = vmatprep.mubr.f32.mxu0 %v690_v52  ;;  %v380_v51 = vld [vmem:[%s944_s3 + $0x78] sm:$0xff] }
  0xff   :  { %v684_v52 = vpack.c.bf16 %v380_v51, %v379_v50 }
 0x1d0   :  { %v199_v57 = vpop.f32.mrb[2].mxu0 }
 0x1d1   :  { %v201_v58 = vpop.f32.mrb[3].mxu0 }
 0x1d2   :  { %v206_v59 = vcombine.low %v199_v57, %v201_v58 }
 0x1d4   :  { %v833_v60 = vsub.f32 %v778_v25, %v206_v59  ;;  %v670_v25 = vpack.c.bf16 %v390_v23, %v389_v22  ;;  %v484_v59 = vld [vmem:[%s945_s4] ss:$0 sm:$0xff] }
 0x1d6   :  { %v209_v61 = vmul.f32 %v833_v60, %v833_v60 }
 0x1d8   :  { %v211_v62 = vcombine.high %v209_v61, %v209_v61 }
 0x1da   :  { %277 = vmatprep.mubr.f32.mxu1 %v211_v62 }
 0x1db   :  { %278 = vmatmul.mubr.f32.vlgmr.msra.gmra.mrb[0].mxu1 %v209_v61 }
 0x1dc   :  { %657 = vmatpush3.bf16.msra.mxu1 %v656_v6 }
 0x1dd   :  { %659 = vmatprep.subr.bf16.mxu1 %v658_v7 }
 0x1e0   :  { %661 = vmatpush3.bf16.msra.mxu1 %v660_v12 }
 0x1e1   :  { %663 = vmatprep.subr.bf16.mxu1 %v662_v13 }
 0x1e4   :  { %665 = vmatpush3.bf16.msra.mxu1 %v664_v18 }
 0x1e5   :  { %667 = vmatprep.subr.bf16.mxu1 %v666_v19 }
 0x1e8   :  { %669 = vmatpush3.bf16.msra.mxu1 %v668_v24 }
 0x1e9   :  { %671 = vmatprep.subr.bf16.mxu1 %v670_v25 }
 0x1ec   :  { %673 = vmatpush3.bf16.msra.mxu1 %v672_v30 }
 0x1ed   :  { %675 = vmatprep.subr.bf16.mxu1 %v674_v31 }
 0x1f0   :  { %677 = vmatpush3.bf16.msra.mxu1 %v676_v34 }
 0x1f1   :  { %679 = vmatprep.subr.bf16.mxu1 %v678_v43 }
 0x1f4   :  { %681 = vmatpush3.bf16.msra.mxu1 %v680_v46 }
 0x1f5   :  { %683 = vmatprep.subr.bf16.mxu1 %v682_v49 }
 0x1f8   :  { %685 = vmatpush3.bf16.msra.mxu1 %v684_v52 }
 0x2ae   :  { %v552_v35 = vpop.f32.mrb[0].mxu1 }
 0x2af   :  { %v553_v36 = vpop.f32.mrb[1].mxu1 }
 0x2b0   :  { %v554_v37 = vadd.f32 %v553_v36, %v552_v35 }
 0x2b2   :  { %v283_v38 = vmul.f32 0.03125, %v554_v37 }
 0x2b4   :  { %v284_v39 = vadd.f32 1e-05, %v283_v38 }
 0x2b6   :  { %688 = vrsqrt.f32 %v284_v39 }
 0x2c0   :  { %v689_v40 = vpop.eup %688 }
 0x2c1   :  { %483 = vmatmul.mubr.msk.f32.vlgmr.msra.gmra.mrb[4].mxu0 %vm129_vm0, %v689_v40 }
 0x394   :  { %v355_v53 = vpop.f32.mrb[4].mxu0 }
 0x395   :  { %v357_v54 = vpop.f32.mrb[5].mxu0 }
 0x396   :  { %v362_v55 = vcombine.low %v355_v53, %v357_v54 }
 0x398   :  { %v364_v56 = vmul.f32 %v362_v55, %v833_v60 }
 0x39a   :  { %v405_v57 = vcombine.high %v364_v56, %v364_v56 }
 0x39c   :  { %471 = vmatprep.mubr.f32.mxu1 %v405_v57 }
 0x39d   :  { %472 = vmatmul.mubr.f32.vlgmr.msra.gmra.mrb[2].mxu1 %v364_v56 }
 0x470   :  { %v587_v58 = vpop.f32.mrb[2].mxu1 }
 0x471   :  { %v588_v61 = vpop.f32.mrb[3].mxu1 }
 0x472   :  { %v589_v62 = vadd.f32 %v588_v61, %v587_v58 }
 0x474   :  { %v474_v63 = vadd.f32 %v589_v62, %v484_v59 }
 0x476   :  { %477 = vst [vmem:[%s946_s5] sm:$0xf] %v474_v63 }

</bundles_post_ra>
